<compile_context>
chip_gen: v7x
topology: tpu7x:2x2x1
jax: 0.10.0
libtpu: 0.0.40
codegen_flags: <defaults>
</compile_context>

<pallas_src>
import functools

import jax
import jax.numpy as jnp
import numpy as np
from jax.experimental import pallas as pl
from jax.experimental.pallas import tpu as pltpu


_SUB = 32             # sublane multiple covering f32/bf16/int8 packing
_LANE = 128
_MAX_GROUPS = 32      # max statically-unrolled lane groups per N step
_MIN_TILE_N = 512     # target minimum lane width when the N axis is split
_DEFAULT_BLOCK_BYTES = 8 * 1024 * 1024    # per input block (double-buffered)
_VMEM_LIMIT_BYTES = 48 * 1024 * 1024      # fits v7x (64 MiB) and v5e/v6e (128)


# ----------------------------------------------------------------------------
# Single N-step kernels (tile_n == N, grid = (R tiles,), all "parallel").
# ----------------------------------------------------------------------------
def _sum_kernel_single(x_ref, sum_ref):
    x = x_ref[...].astype(jnp.float32)
    sum_ref[...] = jnp.sum(x, axis=-1, keepdims=True)


def _nansum_kernel_single(x_ref, sum_ref, cnt_ref):
    x = x_ref[...].astype(jnp.float32)
    valid = jnp.logical_not(jnp.isnan(x))
    sum_ref[...] = jnp.sum(jnp.where(valid, x, 0.0), axis=-1, keepdims=True)
    cnt_ref[...] = jnp.sum(valid.astype(jnp.float32), axis=-1, keepdims=True)


# ----------------------------------------------------------------------------
# Multi N-step kernels.  Grid = (R tiles [parallel], N tiles [arbitrary]).
# Hot path: lane-parallel VALU adds into a wide f32 VMEM scratch.  The XLU
# cross-lane reduce + narrow output store only run on the last N step, and the
# ragged-tail mask only touches the single partially-valid lane group.
# ----------------------------------------------------------------------------
def _sum_kernel_multi(x_ref, sum_ref, acc_ref, *,
                      group_w, n_groups, n_steps, tail_valid):
    j = pl.program_id(1)

    @pl.when(j == 0)
    def _():
        acc_ref[...] = jnp.zeros_like(acc_ref)

    def add_group(lo, width):
        xg = x_ref[:, lo:lo + group_w].astype(jnp.float32)
        if width is not None:   # static partial group on the ragged last tile
            lane = jax.lax.broadcasted_iota(jnp.int32, xg.shape, 1)
            xg = jnp.where(lane < width, xg, 0.0)
        acc_ref[...] += xg

    def add_full(k):
        for g in range(k):
            add_group(g * group_w, None)

    if tail_valid is None:
        add_full(n_groups)
    else:
        @pl.when(j < n_steps - 1)
        def _():
            add_full(n_groups)

        @pl.when(j == n_steps - 1)
        def _():
            full = tail_valid // group_w
            rem = tail_valid % group_w
            add_full(full)            # fully-valid groups: no mask
            if rem:                   # single partially-valid group: mask it
                add_group(full * group_w, rem)
            # fully-invalid groups: skipped entirely (never loaded)

    @pl.when(j == n_steps - 1)
    def _():
        sum_ref[...] = jnp.sum(acc_ref[...], axis=-1, keepdims=True)


def _nansum_kernel_multi(x_ref, sum_ref, cnt_ref, acc_ref, cnt_acc_ref, *,
                         group_w, n_groups, n_steps, tail_valid):
    j = pl.program_id(1)

    @pl.when(j == 0)
    def _():
        acc_ref[...] = jnp.zeros_like(acc_ref)
        cnt_acc_ref[...] = jnp.zeros_like(cnt_acc_ref)

    def add_group(lo, width):
        xg = x_ref[:, lo:lo + group_w].astype(jnp.float32)
        valid = jnp.logical_not(jnp.isnan(xg))
        if width is not None:
            lane = jax.lax.broadcasted_iota(jnp.int32, xg.shape, 1)
            valid = jnp.logical_and(valid, lane < width)
        acc_ref[...] += jnp.where(valid, xg, 0.0)
        cnt_acc_ref[...] += valid.astype(jnp.float32)

    def add_full(k):
        for g in range(k):
            add_group(g * group_w, None)

    if tail_valid is None:
        add_full(n_groups)
    else:
        @pl.when(j < n_steps - 1)
        def _():
            add_full(n_groups)

        @pl.when(j == n_steps - 1)
        def _():
            full = tail_valid // group_w
            rem = tail_valid % group_w
            add_full(full)
            if rem:
                add_group(full * group_w, rem)

    @pl.when(j == n_steps - 1)
    def _():
        sum_ref[...] = jnp.sum(acc_ref[...], axis=-1, keepdims=True)
        cnt_ref[...] = jnp.sum(cnt_acc_ref[...], axis=-1, keepdims=True)


# ----------------------------------------------------------------------------
# Tiling heuristics.
# ----------------------------------------------------------------------------
def _choose_tiles(R, N, itemsize, max_block_bytes):
    """Returns (tile_r, tile_n, group_w, n_groups).

    tile_r : rows per block (full R, or a multiple of 32 for boundary safety)
    tile_n : lanes per block (== N for the single-step path, else a multiple
             of group_w with n_groups <= _MAX_GROUPS so the in-kernel group
             loop is a bounded static unroll)
    """
    # --- R tiling: want >=2 (ideally >=4) R tiles so the leading "parallel"
    #     grid axis can shard across v7x's two TensorCores. ---
    if R >= 4 * _SUB:
        min_r_tiles = 4
    elif R >= 2 * _SUB:
        min_r_tiles = 2
    else:
        min_r_tiles = 1

    if min_r_tiles == 1:
        r_cap = R
    else:
        r_cap = max(_SUB, (-(-R // min_r_tiles)) // _SUB * _SUB)

    # --- Fit (tile_r, tile_n) under the per-block byte budget (the Pallas
    #     pipeline double-buffers each input block). ---
    min_lanes = min(N, _MIN_TILE_N)
    rows_fit = max(1, max_block_bytes // max(1, min_lanes * itemsize))
    if r_cap <= rows_fit:
        tile_r = r_cap
    else:
        tile_r = max(_SUB, rows_fit // _SUB * _SUB)
        if tile_r >= R:         # tiny R: full extent after all
            tile_r = R

    lanes = max(_LANE, max_block_bytes // max(1, tile_r * itemsize))
    if lanes >= N:
        # Single N step: full-extent reduction axis, no lane-group machinery.
        return tile_r, N, N, 1

    # Multi-step: tile_n = n_groups * group_w with a bounded static unroll.
    n128 = max(4, lanes // _LANE)
    gmul = -(-n128 // _MAX_GROUPS)        # ceil
    group_w = _LANE * gmul
    n_groups = max(1, min(_MAX_GROUPS, n128 // gmul))
    tile_n = group_w * n_groups
    if tile_n >= N:                       # rounding pushed past N
        return tile_r, N, N, 1
    return tile_r, tile_n, group_w, n_groups


# ----------------------------------------------------------------------------
# Pallas row-reduce driver.
# ----------------------------------------------------------------------------
def _pallas_row_reduce(x2d, omitnan, max_block_bytes):
    """x2d: (R, N) array (native dtype).  Returns (sum, cnt): sum is (R,1) f32,
    cnt is (R,1) f32 valid-count (None when omitnan=False)."""
    R, N = x2d.shape
    itemsize = jnp.dtype(x2d.dtype).itemsize
    tile_r, tile_n, group_w, n_groups = _choose_tiles(
        R, N, itemsize, max_block_bytes)

    ni = pl.cdiv(R, tile_r)
    nj = pl.cdiv(N, tile_n)

    sum_shape = jax.ShapeDtypeStruct((R, 1), jnp.float32)
    compiler_params = pltpu.CompilerParams(
        dimension_semantics=("parallel",) if nj == 1
        else ("parallel", "arbitrary"),
        vmem_limit_bytes=_VMEM_LIMIT_BYTES,
    )

    if nj == 1:
        grid = (ni,)
        in_specs = [pl.BlockSpec((tile_r, tile_n), lambda i: (i, 0))]
        out_spec = pl.BlockSpec((tile_r, 1), lambda i: (i, 0))
        scratch = []
        kernel = _nansum_kernel_single if omitnan else _sum_kernel_single
    else:
        grid = (ni, nj)
        in_specs = [pl.BlockSpec((tile_r, tile_n), lambda i, j: (i, j))]
        out_spec = pl.BlockSpec((tile_r, 1), lambda i, j: (i, 0))
        tail = N - (nj - 1) * tile_n
        tail = None if tail == tile_n else tail     # None => no ragged tail
        scratch = [pltpu.VMEM((tile_r, group_w), jnp.float32)]
        if omitnan:
            scratch.append(pltpu.VMEM((tile_r, group_w), jnp.float32))
            kernel = functools.partial(
                _nansum_kernel_multi, group_w=group_w, n_groups=n_groups,
                n_steps=nj, tail_valid=tail)
        else:
            kernel = functools.partial(
                _sum_kernel_multi, group_w=group_w, n_groups=n_groups,
                n_steps=nj, tail_valid=tail)

    if omitnan:
        sums, cnts = pl.pallas_call(
            kernel,
            out_shape=(sum_shape, jax.ShapeDtypeStruct((R, 1), jnp.float32)),
            grid_spec=pltpu.PrefetchScalarGridSpec(
                num_scalar_prefetch=0,
                grid=grid,
                in_specs=in_specs,
                out_specs=[out_spec, out_spec],
                scratch_shapes=scratch,
            ),
            compiler_params=compiler_params,
        )(x2d)
        return sums, cnts

    sums = pl.pallas_call(
        kernel,
        out_shape=sum_shape,
        grid_spec=pltpu.PrefetchScalarGridSpec(
            num_scalar_prefetch=0,
            grid=grid,
            in_specs=in_specs,
            out_specs=out_spec,
            scratch_shapes=scratch,
        ),
        compiler_params=compiler_params,
    )(x2d)
    return sums, None


# ----------------------------------------------------------------------------
# Reduction module forward (mirrors nitorch Reduction.forward semantics).
# ----------------------------------------------------------------------------
class Reduction:
    """Base reduction module: reduces over given dims (default: all but
    batch and channel)."""

    def __init__(self, dim=None, keepdim=False, omitnan=False,
                 max_block_bytes=_DEFAULT_BLOCK_BYTES):
        self.dim = dim
        self.keepdim = keepdim
        self.omitnan = omitnan
        self.max_block_bytes = max_block_bytes

    def forward(self, x, reduce="sum", **overload):
        """reduce: 'sum' or 'mean' (nan-omitting variants via omitnan)."""
        dim = overload.get("dim", self.dim)
        keepdim = overload.get("keepdim", self.keepdim)
        omitnan = overload.get("omitnan", self.omitnan)

        nd = x.ndim
        if dim is None:
            dim = list(range(2, nd))
        if isinstance(dim, slice):
            start = dim.start if dim.start is not None else 2
            stop = dim.stop if dim.stop is not None else nd
            step = dim.step if dim.step is not None else 1
            dim = list(range(start, stop, step))
        if isinstance(dim, int):
            dim = [dim]
        dim = sorted(d % nd for d in dim)

        keep_axes = [d for d in range(nd) if d not in dim]
        perm = keep_axes + dim
        if perm != list(range(nd)):
            # TODO(synk): express non-contiguous reduced dims via BlockSpec
            # index_map instead of a materializing HBM transpose.
            xt = jnp.transpose(x, perm)
        else:
            xt = x

        keep_shape = [x.shape[d] for d in keep_axes]
        R = int(np.prod(keep_shape)) if keep_shape else 1
        N = int(np.prod([x.shape[d] for d in dim])) if dim else 1

        # Native dtype: the f32 cast happens per-group inside the kernel.
        # TODO(synk): fold short rows when N is small / not 128-aligned to
        # recover lane utilization and long aligned DMA rows.
        # TODO(synk): split-N two-pass reduce for tiny-R / huge-N shapes so
        # megacore + pipelining still apply there.
        x2d = xt.reshape(R, N)

        sums, cnts = _pallas_row_reduce(
            x2d, omitnan=omitnan, max_block_bytes=self.max_block_bytes)

        if reduce == "sum":
            out = sums
        elif reduce == "mean":
            if omitnan:
                out = sums / cnts          # all-NaN rows -> NaN (torch.nanmean)
            else:
                out = sums / float(N)
        else:
            raise ValueError(f"unsupported reduce: {reduce}")

        out = out.reshape(keep_shape if keep_shape else ()).astype(x.dtype)
        if keepdim:
            for d in dim:
                out = jnp.expand_dims(out, d)
        return out

    __call__ = forward


# ----------------------------------------------------------------------------
# Demo / self-test
# ----------------------------------------------------------------------------
if __name__ == "__main__":
    key = jax.random.PRNGKey(0)
    B, C, H, W = 2, 4, 16, 16
    x = jax.random.normal(key, (B, C, H, W), dtype=jnp.float32)

    # Sprinkle a few NaNs to exercise the omitnan path.
    x_nan = x.at[0, 1, 3, 5].set(jnp.nan).at[1, 2, 0, 0].set(jnp.nan)

    mod = Reduction()  # default: reduce all spatial dims, keepdim=False

    # 1) sum over spatial dims (single N-step path)
    out_sum = jax.block_until_ready(mod(x, reduce="sum"))
    ref_sum = jnp.sum(x, axis=(2, 3))
    assert out_sum.shape == (B, C)
    assert jnp.allclose(out_sum, ref_sum, rtol=1e-5, atol=1e-4)

    # 2) mean with keepdim
    out_mean = jax.block_until_ready(mod(x, reduce="mean", keepdim=True))
    ref_mean = jnp.mean(x, axis=(2, 3), keepdims=True)
    assert out_mean.shape == (B, C, 1, 1)
    assert jnp.allclose(out_mean, ref_mean, rtol=1e-5, atol=1e-5)

    # 3) nanmean (omitnan=True)
    out_nanmean = jax.block_until_ready(mod(x_nan, reduce="mean", omitnan=True))
    ref_nanmean = jnp.nanmean(x_nan, axis=(2, 3))
    assert jnp.allclose(out_nanmean, ref_nanmean, rtol=1e-5, atol=1e-5)

    # 4) explicit dim override (R=128 -> >=4 parallel R tiles)
    out_d3 = jax.block_until_ready(mod(x, reduce="sum", dim=3))
    ref_d3 = jnp.sum(x, axis=3)
    assert out_d3.shape == (B, C, H)
    assert jnp.allclose(out_d3, ref_d3, rtol=1e-5, atol=1e-4)

    # 5) native bf16 input (no wrapper upcast), f32 accumulation in-kernel
    xb = x.astype(jnp.bfloat16)
    out_bf16 = jax.block_until_ready(mod(xb, reduce="sum"))
    ref_bf16 = jnp.sum(xb.astype(jnp.float32), axis=(2, 3)).astype(jnp.bfloat16)
    assert out_bf16.dtype == jnp.bfloat16
    assert jnp.allclose(out_bf16.astype(jnp.float32),
                        ref_bf16.astype(jnp.float32), rtol=2e-2, atol=2e-2)

    # 6) multi N-step + ragged tail (force via a small block budget)
    x2 = jax.random.normal(jax.random.PRNGKey(1), (2, 4, 37, 91),
                           dtype=jnp.float32)
    x2_nan = x2.at[0, 0, 0, 0].set(jnp.nan).at[1, 3, 36, 90].set(jnp.nan)
    mod_small = Reduction(max_block_bytes=64 * 1024)
    out_big = jax.block_until_ready(mod_small(x2, reduce="sum"))
    assert jnp.allclose(out_big, jnp.sum(x2, axis=(2, 3)), rtol=1e-5, atol=1e-3)
    out_big_nm = jax.block_until_ready(
        mod_small(x2_nan, reduce="mean", omitnan=True))
    assert jnp.allclose(out_big_nm, jnp.nanmean(x2_nan, axis=(2, 3)),
                        rtol=1e-5, atol=1e-5)

    # 7) bf16 multi N-step ragged path
    mod_tiny = Reduction(max_block_bytes=16 * 1024)
    x2b = x2.astype(jnp.bfloat16)
    out_b2 = jax.block_until_ready(mod_tiny(x2b, reduce="sum"))
    ref_b2 = jnp.sum(x2b.astype(jnp.float32), axis=(2, 3))
    assert jnp.allclose(out_b2.astype(jnp.float32), ref_b2,
                        rtol=2e-2, atol=2e-1)

    # 8) R tiling with a partial boundary block (single N-step, small budget)
    x3 = jax.random.normal(jax.random.PRNGKey(2), (2, 4, 45, 91),
                           dtype=jnp.float32)
    out_r = jax.block_until_ready(mod_tiny(x3, reduce="sum", dim=3))
    assert out_r.shape == (2, 4, 45)
    assert jnp.allclose(out_r, jnp.sum(x3, axis=3), rtol=1e-5, atol=1e-4)

    # 9) default-budget multi-step case: 8 MiB blocks, R split into 4 parallel
    #    tiles, ragged N tail whose partial groups vanish (rem == 0)
    x4 = jax.random.normal(jax.random.PRNGKey(3), (8, 16, 384, 384),
                           dtype=jnp.float32)
    out4 = jax.block_until_ready(mod(x4, reduce="sum"))
    ref4 = jnp.sum(x4, axis=(2, 3))
    assert out4.shape == (8, 16)
    assert jnp.allclose(out4, ref4, rtol=1e-3, atol=5e-2)

    print("KERNEL_OK")
</pallas_src>

<mosaic_0001>
module attributes {stable_mosaic.version = 11 : i64} {
  func.func @_sum_kernel_single(%arg0: i32, %arg1: memref<8x256xf32, #tpu.memory_space<vmem>>, %arg2: memref<8x1xf32, #tpu.memory_space<vmem>>) attributes {dimension_semantics = [#tpu.dimension_semantics<parallel>], iteration_bounds = array<i64: 1>, scalar_prefetch = 0 : i64, scratch_operands = 0 : i64, tpu.core_type = #tpu.core_type<tc>, window_params = [{transform_indices = @transform_0, window_bounds = array<i64: 8, 256>}, {transform_indices = @transform_1, window_bounds = array<i64: 8, 1>}]} {
    %c0 = arith.constant 0 : index
    %c0_0 = arith.constant 0 : index
    %0 = vector.load %arg1[%c0, %c0_0] : memref<8x256xf32, #tpu.memory_space<vmem>>, vector<8x256xf32>
    %cst = arith.constant dense<0.000000e+00> : vector<8xf32>
    %1 = vector.multi_reduction <add>, %0, %cst [1] : vector<8x256xf32> to vector<8xf32>
    %2 = vector.shape_cast %1 : vector<8xf32> to vector<8x1xf32>
    %c0_1 = arith.constant 0 : index
    %c0_2 = arith.constant 0 : index
    %3 = vector.load %arg2[%c0_1, %c0_2] : memref<8x1xf32, #tpu.memory_space<vmem>>, vector<8x1xf32>
    tpu.vector_store %arg2[%c0_1, %c0_2], %2 {strides = array<i32>} : memref<8x1xf32, #tpu.memory_space<vmem>>, vector<8x1xf32>,
    return
  }
  func.func @transform_0(%arg0: i32) -> (i32, i32) {
    %c0_i32 = arith.constant 0 : i32
    %c0_i32_0 = arith.constant 0 : i32
    return %arg0, %c0_i32 : i32, i32
  }
  func.func @transform_1(%arg0: i32) -> (i32, i32) {
    %c0_i32 = arith.constant 0 : i32
    %c0_i32_0 = arith.constant 0 : i32
    return %arg0, %c0_i32 : i32, i32
  }
}

</mosaic_0001>

<bundles_post_ra>
// kernel: tpu_custom_call.1
= control target key start
LH: loop header
LB: loop body
LE: loop exit
PB: predicated region body
PF: predicated region fallthrough
CT: control target
= control target key end

     0   :  { %6 = vsyncpa [#allocation3], 0  ;;  %s57_s6 = smov [#allocation2]   ;;  %s83_s0 = inlined_call_operand.hbm [shape: f32[8,256], index: 0, kind: input, shape index: {}]   ;;  %s84_s1 = inlined_call_operand.vmem [shape: f32[8,1], index: 1, kind: output, shape index: {}]  }
   0x1   :  { %s13_s7 = sshll.u32 %s57_s6, 4  ;;  %s33_s10 = scalar_lea.hbm %s83_s0, 256  ;;  %s14_s7 = int_to_ptr.vmem [resolvable:$true] %s13_s7 }
   0x2   :  { %p34_p0 = scmp.ne.s32.totalorder %s83_s0, %s33_s10  ;;  %p37_p1 = scmp.lt.u32.totalorder %s33_s10, %s83_s0 }
   0x4   :  { %p39_p2 = pnand %p37_p1, %p34_p0 }
   0x6   :  { %42 = shalt.err (!%p39_p2)
}
   0x7   :  { %s43_s15 = scalar_lea.vmem %s14_s7, 256  ;;  %p48_p4 = scmp.lt.s32.totalorder %s14_s7, %s14_s7 }
   0x8   :  { %p44_p3 = scmp.ne.s32.totalorder %s14_s7, %s43_s15  ;;  %p49_p5 = scmp.lt.s32.totalorder %s43_s15, %s43_s15 }
   0xa   :  { %p50_p6 = por %p49_p5, %p48_p4 }
   0xc   :  { %p51_p7 = pnand %p50_p6, %p44_p3 }
   0xe   :  { %54 = shalt.err (!%p51_p7)
}
   0xf   :  { %16 = dma.hbm_to_vmem [thread:$0]  %s83_s0, 256, %s14_s7, [#allocation3]  }
  0x10   :  { %55 = dma.done.wait [#allocation3], 256  }
  0x11   :  { %56 = vsyncadd [#allocation3], 4294967040  ;;  %v20_v0 = vld [vmem:[#allocation2] sm:$0xff]  ;;  %v21_v1 = vld [vmem:[#allocation2 + $0x8] sm:$0xff]  ;;  %vm25_vm0 = vcmask 7168  }
  0x12   :  { %v22_v2 = vadd.f32 %v21_v1, %v20_v0 }
  0x14   :  { %23 = vadd.xlane.f32.xlu0 %v22_v2 }
  0xa1   :  { %v24_v3 = vpop.xlane.xlu0 %23 }
  0xa2   :  { %26 = vst.msk [vmem:[%s84_s1] sm:$0xff] %vm25_vm0, %v24_v3 }
  0xa3   :  { %31 = vsyncpa [#allocation3], 1 }

</bundles_post_ra>
